<compile_context>
chip_gen: v6e
topology: v6e:2x2x1
jax: 0.10.0
libtpu: 0.0.40
codegen_flags: <defaults>
</compile_context>

<pallas_src>
import jax
import jax.numpy as jnp
from jax.experimental import pallas as pl
from jax.experimental.pallas import tpu as pltpu


def _attention_kernel(x_ref, w_ref, b_ref, o_ref):
    # x_ref : (B, F) VMEM   input (features lane-dense)
    # w_ref : (1, F) VMEM   qkv_proj weight
    # b_ref : (1,)   SMEM   qkv_proj bias (scalar read)
    # o_ref : (1, B) VMEM   output row (wrapper reshapes to (B,))
    b = b_ref[0]

    # Linear(8, 1): F=8, N=1 -> VPU broadcast-multiply + XLU lane-reduce
    # (an MXU matmul would run at <1% utilization for K=8, N=1).
    qkv_col = jnp.sum(x_ref[...] * w_ref[...], axis=-1, keepdims=True) + b    # (B, 1)

    # Single tiny in-kernel transpose (XLU) gives the lane-dense row form;
    # this replaces the previous duplicated linear on a wrapper-transposed
    # copy of x and makes `s` exactly symmetric.
    qkv_row = jnp.transpose(qkv_col)                                          # (1, B)

    # scale_factor == value.size(1) ** -0.5 == 1.0 -> `* scale` / `/ scale` elided.

    # scores[i, j] = qkv[i] * qkv[j] : rank-1 outer product == broadcast mul (VPU).
    s = qkv_col * qkv_row                                                     # (B, B)

    # Row-wise softmax of the logical scores == column-wise (sublane) softmax
    # of `s`, since `s` is exactly symmetric.  Keeps (1, B) intermediates
    # lane-dense.
    m = jnp.max(s, axis=0, keepdims=True)                                     # (1, B)
    e = jnp.exp(s - m)                                                        # (B, B)
    l = jnp.sum(e, axis=0, keepdims=True)                                     # (1, B)
    p_t = e / l                                  # p_t[j, i] == probs[i, j]

    # dropout(p=0.0) -> identity.
    # output[i] = sum_j probs[i, j] * value[j]  -> sublane reduce -> (1, B) row.
    o_ref[...] = jnp.sum(p_t * qkv_col, axis=0, keepdims=True).astype(o_ref.dtype)


@jax.jit
def model_forward(x, qkv_w, qkv_b):
    """x: (B, F) float32, qkv_w: (1, F) float32, qkv_b: (1,) float32 -> (B,) float32."""
    B, _ = x.shape
    out_row = pl.pallas_call(
        _attention_kernel,
        out_shape=jax.ShapeDtypeStruct((1, B), jnp.float32),
        in_specs=[
            pl.BlockSpec(memory_space=pltpu.MemorySpace.VMEM),   # x  (B, F)
            pl.BlockSpec(memory_space=pltpu.MemorySpace.VMEM),   # w  (1, F)
            pl.BlockSpec(memory_space=pltpu.MemorySpace.SMEM),   # b  (1,)
        ],
        out_specs=pl.BlockSpec(memory_space=pltpu.MemorySpace.VMEM),
    )(x, qkv_w, qkv_b)
    # torch .squeeze() on (B, 1) -> (B,); our (1, B) row -> reshape (fuses under jit).
    return out_row.reshape(B)


def _reference(x, qkv_w, qkv_b):
    # pure-JAX reference of the same (repaired) semantics
    qkv = x @ qkv_w.T + qkv_b                              # (B, 1)
    q = k = v = qkv
    scores = q @ k.T                                       # scale == 1.0
    p = jax.nn.softmax(scores, axis=-1)
    return jnp.squeeze(p @ v, axis=-1)


if __name__ == "__main__":
    key = jax.random.PRNGKey(0)
    kx, kw, kb = jax.random.split(key, 3)

    B, F = 2, 8
    x = jax.random.normal(kx, (B, F), dtype=jnp.float32)
    # deterministic Linear(8, 1) params (uniform +-1/sqrt(F), like torch default)
    bound = 1.0 / (F ** 0.5)
    qkv_w = jax.random.uniform(kw, (1, F), minval=-bound, maxval=bound, dtype=jnp.float32)
    qkv_b = jax.random.uniform(kb, (1,), minval=-bound, maxval=bound, dtype=jnp.float32)
    # (v_proj = Linear(8, 1) exists in the module but only its weight *shape* is
    #  used in forward, to select the size index for scale_factor -> no params here.)

    out = model_forward(x, qkv_w, qkv_b)
    out = jax.block_until_ready(out)

    ref = _reference(x, qkv_w, qkv_b)
    assert out.shape == (B,), out.shape
    assert jnp.allclose(out, ref, atol=1e-4, rtol=1e-4), (out, ref)

    print("KERNEL_OK")
</pallas_src>

<mosaic_0001>
module attributes {stable_mosaic.version = 11 : i64} {
  func.func @_attention_kernel(%arg0: memref<2x8xf32, #tpu.memory_space<vmem>>, %arg1: memref<1x8xf32, #tpu.memory_space<vmem>>, %arg2: memref<1xf32, #tpu.memory_space<smem>>, %arg3: memref<1x2xf32, #tpu.memory_space<vmem>>) attributes {dimension_semantics = [], scalar_prefetch = 0 : i64, scratch_operands = 0 : i64, tpu.core_type = #tpu.core_type<tc>} {
    %c0 = arith.constant 0 : index
    %0 = memref.load %arg2[%c0] : memref<1xf32, #tpu.memory_space<smem>>
    %c0_0 = arith.constant 0 : index
    %c0_1 = arith.constant 0 : index
    %1 = vector.load %arg0[%c0_0, %c0_1] : memref<2x8xf32, #tpu.memory_space<vmem>>, vector<2x8xf32>
    %c0_2 = arith.constant 0 : index
    %c0_3 = arith.constant 0 : index
    %2 = vector.load %arg1[%c0_2, %c0_3] : memref<1x8xf32, #tpu.memory_space<vmem>>, vector<1x8xf32>
    %3 = vector.broadcast %2 : vector<1x8xf32> to vector<2x8xf32>
    %4 = arith.mulf %1, %3 : vector<2x8xf32>
    %cst = arith.constant dense<0.000000e+00> : vector<2xf32>
    %5 = vector.multi_reduction <add>, %4, %cst [1] : vector<2x8xf32> to vector<2xf32>
    %6 = vector.shape_cast %5 : vector<2xf32> to vector<2x1xf32>
    %7 = vector.broadcast %0 : f32 to vector<2x1xf32>
    %8 = arith.addf %6, %7 : vector<2x1xf32>
    %9 = tpu.transpose %8, [1, 0] : vector<2x1xf32> -> vector<1x2xf32>
    %10 = vector.broadcast %8 : vector<2x1xf32> to vector<2x2xf32>
    %11 = vector.broadcast %9 : vector<1x2xf32> to vector<2x2xf32>
    %12 = arith.mulf %10, %11 : vector<2x2xf32>
    %cst_4 = arith.constant dense<0xFF800000> : vector<2xf32>
    %13 = vector.multi_reduction <maximumf>, %12, %cst_4 [0] : vector<2x2xf32> to vector<2xf32>
    %14 = vector.shape_cast %13 : vector<2xf32> to vector<1x2xf32>
    %15 = vector.broadcast %14 : vector<1x2xf32> to vector<2x2xf32>
    %16 = arith.subf %12, %15 : vector<2x2xf32>
    %17 = math.exp %16 : vector<2x2xf32>
    %cst_5 = arith.constant dense<0.000000e+00> : vector<2xf32>
    %18 = vector.multi_reduction <add>, %17, %cst_5 [0] : vector<2x2xf32> to vector<2xf32>
    %19 = vector.shape_cast %18 : vector<2xf32> to vector<1x2xf32>
    %20 = vector.broadcast %19 : vector<1x2xf32> to vector<2x2xf32>
    %21 = arith.divf %17, %20 : vector<2x2xf32>
    %22 = vector.broadcast %8 : vector<2x1xf32> to vector<2x2xf32>
    %23 = arith.mulf %21, %22 : vector<2x2xf32>
    %cst_6 = arith.constant dense<0.000000e+00> : vector<2xf32>
    %24 = vector.multi_reduction <add>, %23, %cst_6 [0] : vector<2x2xf32> to vector<2xf32>
    %25 = vector.shape_cast %24 : vector<2xf32> to vector<1x2xf32>
    %c0_7 = arith.constant 0 : index
    %c0_8 = arith.constant 0 : index
    %26 = vector.load %arg3[%c0_7, %c0_8] : memref<1x2xf32, #tpu.memory_space<vmem>>, vector<1x2xf32>
    tpu.vector_store %arg3[%c0_7, %c0_8], %25 {strides = array<i32>} : memref<1x2xf32, #tpu.memory_space<vmem>>, vector<1x2xf32>,
    return
  }
}

</mosaic_0001>

<bundles_post_ra>
// kernel: model_forward.1
= control target key start
LH: loop header
LB: loop body
LE: loop exit
PB: predicated region body
PF: predicated region fallthrough
CT: control target
= control target key end

     0   :  { %vm26_vm0 = vcmask 58368   ;;  %s178_s0 = inlined_call_operand.vmem [shape: f32[2,8], index: 0, kind: input, shape index: {}]   ;;  %s179_s1 = inlined_call_operand.vmem [shape: f32[1,8], index: 1, kind: input, shape index: {}]   ;;  %s180_s2 = inlined_call_operand.<no memory space> [shape: f32[1], index: 2, kind: input, shape index: {}]   ;;  %s181_s3 = inlined_call_operand.hbm [shape: f32[1,2], index: 3, kind: output, shape index: {}]  }
   0x1   :  { %v17_v0 = vld [vmem:[%s178_s0] sm:$0x3] }
   0x2   :  { %v113_v1 = vld [vmem:[%s179_s1] ss:$0 sm:$0xff] }
   0x3   :  { %v25_v2 = vmul.f32 %v113_v1, %v17_v0 }
   0x4   :  { %9 = vsyncpa [#allocation4], 0  ;;  %v30_v4 = vstv %s180_s2  ;;  %v64_v7 = vlaneseq  ;;  %vm69_vm1 = vcmask 9216   ;;  %s142_s0 = smov [#allocation3]   ;;  %vm97_vm2 = vcmask 8192  }
   0x5   :  { %v27_v3 = vsel %vm26_vm0, %v25_v2, 0.0  ;;  %s105_s1 = sshll.u32 %s142_s0, 4  ;;  %s106_s1 = int_to_ptr.vmem [resolvable:$true] %s105_s1 }
   0x6   :  { %28 = vadd.xlane.f32.xlu0 %v27_v3  ;;  %v65_v8 = vshrl.u32 %v64_v7, 7  ;;  %s120_s2 = scalar_lea.vmem %s106_s1, 16  ;;  %s124_s18 = scalar_lea.vmem %s106_s1, 32 }
   0x7   :  { %p121_p0 = scmp.ne.s32.totalorder %s106_s1, %s120_s2  ;;  %p125_p1 = scmp.lt.s32.totalorder %s106_s1, %s106_s1 }
   0x8   :  { %v66_v9 = vsub.s32 0, %v65_v8  ;;  %p126_p2 = scmp.lt.s32.totalorder %s124_s18, %s120_s2 }
   0xa   :  { %p127_p3 = por %p126_p2, %p125_p1 }
   0xc   :  { %p128_p4 = pnand %p127_p3, %p121_p0 }
  0x8f   :  { %v29_v5 = vpop.xlane.xlu0 %28 }
  0x90   :  { %v31_v6 = vadd.f32 %v30_v4, %v29_v5 }
  0x92   :  { %32 = vxpose.xlu0.b32.start.end [1/1] (short) (narrow) %v31_v6, 8 }
 0x10e   :  { %v48_v10 = vpop.trf.xlu0 }
 0x10f   :  { %v67_v11 = vrot.slane %v48_v10, %v66_v9 }
 0x111   :  { %v68_v12 = vmul.f32 %v67_v11, %v31_v6 }
 0x113   :  { %v70_v13 = vsel %vm69_vm1, %v68_v12, -inf }
 0x114   :  { %v71_v14 = vrot.slane %v70_v13, 4 }
 0x116   :  { %v72_v15 = vmax.f32 %v70_v13, %v71_v14 }
 0x118   :  { %v73_v16 = vrot.slane %v72_v15, 2 }
 0x11a   :  { %v74_v17 = vmax.f32 %v72_v15, %v73_v16 }
 0x11c   :  { %v75_v18 = vrot.slane %v74_v17, 1 }
 0x11e   :  { %v76_v19 = vmax.f32 %v74_v17, %v75_v18 }
 0x120   :  { %v77_v20 = vsub.f32 %v68_v12, %v76_v19 }
 0x122   :  { %v78_v21 = vmul.f32 1.442695, %v77_v20 }
 0x124   :  { %116 = vpow2.f32 %v78_v21 }
 0x131   :  { %v117_v22 = vpop.eup %116 }
 0x132   :  { %v80_v23 = vsel %vm69_vm1, %v117_v22, 0.0 }
 0x133   :  { %v81_v24 = vrot.slane %v80_v23, 4 }
 0x135   :  { %v82_v25 = vadd.f32 %v81_v24, %v80_v23 }
 0x137   :  { %v83_v26 = vrot.slane %v82_v25, 2 }
 0x139   :  { %v84_v27 = vadd.f32 %v83_v26, %v82_v25 }
 0x13b   :  { %v85_v28 = vrot.slane %v84_v27, 1 }
 0x13d   :  { %v86_v29 = vadd.f32 %v85_v28, %v84_v27 }
 0x13f   :  { %118 = vrcp.f32 %v86_v29 }
 0x14c   :  { %v119_v30 = vpop.eup %118 }
 0x14d   :  { %v88_v31 = vmul.f32 %v119_v30, %v117_v22 }
 0x14f   :  { %v89_v32 = vmul.f32 %v88_v31, %v31_v6 }
 0x151   :  { %v90_v33 = vsel %vm69_vm1, %v89_v32, 0.0 }
 0x152   :  { %v91_v34 = vrot.slane %v90_v33, 4 }
 0x154   :  { %v92_v35 = vadd.f32 %v91_v34, %v90_v33 }
 0x156   :  { %v93_v36 = vrot.slane %v92_v35, 2 }
 0x158   :  { %v94_v37 = vadd.f32 %v93_v36, %v92_v35 }
 0x15a   :  { %v95_v38 = vrot.slane %v94_v37, 1 }
 0x15c   :  { %v96_v39 = vadd.f32 %v95_v38, %v94_v37 }
 0x15e   :  { %98 = vst.msk [vmem:[#allocation3] sm:$0x1] %vm97_vm2, %v96_v39 }
 0x15f   :  { %131 = shalt.err (!%p128_p4)
}
 0x160   :  { %108 = dma.vmem_to_hbm [thread:$0]  %s106_s1, 16, %s181_s3, [#allocation4]  }
 0x161   :  { %140 = dma.done.wait [#allocation4], 16  }
 0x162   :  { %141 = vsyncadd [#allocation4], 4294967280 }
 0x163   :  { %112 = vsyncpa [#allocation4], 1 }

</bundles_post_ra>
